<compile_context>
chip_gen: v7x
topology: tpu7x:2x2x1
jax: 0.10.0
libtpu: 0.0.40
codegen_flags: <defaults>
</compile_context>

<pallas_src>
from dataclasses import dataclass
from functools import partial
from typing import List, NamedTuple, Optional

import numpy as np
import jax
import jax.numpy as jnp
from jax import lax
from jax.experimental import pallas as pl
from jax.experimental.pallas import tpu as pltpu

_LANES = 128
_SUBLANES = 8


@dataclass
class InputMetadata:
    num_prompts: int
    prompt_lens: List[int]
    num_generation_tokens: int


# --------------------------------------------------------------- chip query
def _chip_info():
    """Returns (vmem_capacity_bytes, tensorcores_per_chip), generation-aware."""
    kind = ""
    try:
        kind = jax.devices()[0].device_kind.lower()
    except Exception:
        pass
    is_v7 = ("v7" in kind) or ("tpu7" in kind)
    is_megacore = any(t in kind for t in ("v4", "v5p"))
    num_tc = 2 if (is_v7 or is_megacore) else 1       # v5e/v6e: single TC

    vmem = None
    try:
        info = pltpu.get_tpu_info()
        for name in ("vmem_capacity_bytes", "vmem_size_bytes", "vmem_bytes"):
            v = getattr(info, name, None)
            if v:
                vmem = int(v)
                break
    except Exception:
        pass
    if vmem is None:
        # generation-aware fallback: v7x has 64 MiB/TC, v5e/v6e/v5p 128 MiB.
        vmem = (64 << 20) if is_v7 else (128 << 20)
    return vmem, num_tc


class _Plan(NamedTuple):
    V: int                # true vocab size used for the argmax
    H: int
    tv: int               # embedding rows streamed per grid step
    n_splits: int         # leading "parallel" axis (one per TensorCore)
    tiles_per_split: int
    V_pad: int            # vocab rows of the prepared (padded) embedding
    vmem_cap: int         # scoped-VMEM ceiling for this chip generation


def _plan_tiling(V: int, H: int, dtype_bytes: int = 2) -> _Plan:
    vmem, num_tc = _chip_info()
    # Size the double-buffered embedding slab to ~55% of VMEM (leaves room for
    # the resident hidden block, the f32 logits tile, outputs and scratch).
    # v7x (64 MiB) -> tv=2048 for H=4096 bf16; v5e/v6e (128 MiB) -> tv=4096.
    budget = int(vmem * 0.55)
    tv = budget // max(1, 2 * H * dtype_bytes)
    tv = (tv // _LANES) * _LANES
    v_ceil = ((V + _LANES - 1) // _LANES) * _LANES
    tv = max(_LANES, min(4096, tv, v_ceil))

    tiles_total = -(-V // tv)
    n_splits = max(1, min(num_tc, tiles_total))       # 1 on v5e/v6e, 2 on v7x
    tiles_per_split = -(-tiles_total // n_splits)
    V_pad = n_splits * tiles_per_split * tv

    vmem_cap = (56 << 20) if vmem <= (64 << 20) else (100 << 20)
    return _Plan(V=V, H=H, tv=tv, n_splits=n_splits,
                 tiles_per_split=tiles_per_split, V_pad=V_pad,
                 vmem_cap=vmem_cap)


# ------------------------------------------------------- embedding weight prep
def prepare_embedding(embedding: jax.Array,
                      vocab_size: Optional[int] = None,
                      compute_dtype=jnp.bfloat16):
    """One-time weight prep: slice to vocab_size, cast to bf16, pad the vocab
    axis to a whole number of tiles.  Call at weight-load, NOT per sample."""
    V_emb, H = embedding.shape
    V = V_emb if vocab_size is None else min(int(vocab_size), V_emb)
    plan = _plan_tiling(V, H, jnp.dtype(compute_dtype).itemsize)
    e = embedding[:V].astype(compute_dtype)
    if plan.V_pad != V:
        # zero rows beyond V are masked to -inf inside the kernel
        e = jnp.pad(e, ((0, plan.V_pad - V), (0, 0)))
    return e, plan


# ------------------------------------------------------------------- kernel
def _make_greedy_kernel(vocab_size: int, tv: int, tiles_per_split: int,
                        needs_mask: bool):
    n_sub = tv // _LANES

    def kernel(h_ref, e_ref, max_ref, idx_ref):
        i = pl.program_id(0)   # vocab split ("parallel": one per TensorCore)
        j = pl.program_id(1)   # vocab tile within split (reduction axis)

        @pl.when(j == 0)
        def _():
            max_ref[...] = jnp.full_like(max_ref, -jnp.inf)
            idx_ref[...] = jnp.zeros_like(idx_ref)

        # (S, tv) logits tile; contracting dims (1, 1) feed the MXU directly
        # with the [tv, H] rhs layout (no transpose of the streamed tile).
        logits = lax.dot_general(
            h_ref[...], e_ref[...],
            dimension_numbers=(((1,), (1,)), ((), ())),
            preferred_element_type=jnp.float32)

        s = logits.shape[0]
        base = (i * tiles_per_split + j) * tv
        lane = lax.broadcasted_iota(jnp.int32, (s, _LANES), 1)

        # Lane-dense running reduction: pure VPU maximum/where per 128 lanes;
        # strict ">" keeps the first occurrence within each lane class.  The
        # single cross-lane reduction happens once, outside the kernel.
        run_max = max_ref[0]        # (S, 128) running max
        run_idx = idx_ref[0]        # (S, 128) winning global column
        for b in range(n_sub):
            col = base + b * _LANES + lane
            val = logits[:, b * _LANES:(b + 1) * _LANES]
            if needs_mask:
                val = jnp.where(col < vocab_size, val, -jnp.inf)
            better = val > run_max
            run_idx = jnp.where(better, col, run_idx)
            run_max = jnp.where(better, val, run_max)
        max_ref[0] = run_max
        idx_ref[0] = run_idx

    return kernel


def _block_spec(block_shape, index_map, buffer_count=None):
    """BlockSpec with an optional buffering request; falls back to the default
    pipeline mode if this jax version lacks `pipeline_mode`."""
    if buffer_count is not None and hasattr(pl, "Buffered"):
        try:
            return pl.BlockSpec(block_shape, index_map,
                                pipeline_mode=pl.Buffered(buffer_count))
        except TypeError:
            pass
    return pl.BlockSpec(block_shape, index_map)


# ------------------------------------------------- jitted end-to-end sampler
@partial(jax.jit,
         static_argnames=("vocab_size", "tv", "n_splits", "tiles_per_split",
                          "vmem_cap"))
def _greedy_sample_core(hidden_states, indices, emb_prepared, *, vocab_size,
                        tv, n_splits, tiles_per_split, vmem_cap):
    """hidden_states: [N, H]; indices: optional int32 row gather;
    emb_prepared: [V_pad, H] bf16 (from prepare_embedding). Returns int32 [S]."""
    if indices is not None:
        hidden_states = jnp.take(hidden_states, indices, axis=0)

    S, H = hidden_states.shape
    V_pad = emb_prepared.shape[0]
    db = emb_prepared.dtype.itemsize
    needs_mask = V_pad != vocab_size

    h = hidden_states.astype(emb_prepared.dtype)
    Sp = max(_SUBLANES, ((S + _SUBLANES - 1) // _SUBLANES) * _SUBLANES)
    if Sp != S:
        h = jnp.pad(h, ((0, Sp - S), (0, 0)))

    kernel = _make_greedy_kernel(vocab_size, tv, tiles_per_split, needs_mask)

    # Hidden is never re-fetched: pin it to a single buffer once it is big
    # enough to matter for the VMEM budget (decode batches on v7x).
    hid_bufs = 1 if Sp * H * db > (1 << 20) else None
    # Keep the DMA engine issuing across step boundaries with a 3rd buffer only
    # when tiles stay small and the stream is long (very large H on v7x).
    emb_bufs = 3 if (tv * H * db < (8 << 20) and tiles_per_split >= 8) else None

    in_specs = [
        _block_spec((Sp, H), lambda i, j: (0, 0), buffer_count=hid_bufs),
        _block_spec((tv, H), lambda i, j: (i * tiles_per_split + j, 0),
                    buffer_count=emb_bufs),
    ]

    # Scoped-VMEM estimate: buffered embedding slab + hidden block + f32 MXU
    # logits tile + double-buffered (max, idx) output slabs + headroom.
    vmem_need = ((emb_bufs or 2) * tv * H + (hid_bufs or 2) * Sp * H) * db \
        + Sp * tv * 4 \
        + 2 * 2 * Sp * _LANES * (4 + 4) \
        + (8 << 20)
    vmem_limit = int(min(max(vmem_need, 32 << 20), vmem_cap))

    cost = pl.CostEstimate(
        flops=2 * Sp * H * V_pad,
        transcendentals=0,
        bytes_accessed=V_pad * H * db + Sp * H * db
        + 2 * n_splits * Sp * _LANES * 4)

    max_out, idx_out = pl.pallas_call(
        kernel,
        out_shape=(
            jax.ShapeDtypeStruct((n_splits, Sp, _LANES), jnp.float32),
            jax.ShapeDtypeStruct((n_splits, Sp, _LANES), jnp.int32),
        ),
        grid_spec=pltpu.PrefetchScalarGridSpec(
            num_scalar_prefetch=0,
            grid=(n_splits, tiles_per_split),
            in_specs=in_specs,
            out_specs=[
                pl.BlockSpec((1, Sp, _LANES), lambda i, j: (i, 0, 0)),
                pl.BlockSpec((1, Sp, _LANES), lambda i, j: (i, 0, 0)),
            ],
        ),
        compiler_params=pltpu.CompilerParams(
            dimension_semantics=("parallel", "arbitrary"),
            vmem_limit_bytes=vmem_limit),
        cost_estimate=cost,
    )(h, emb_prepared)

    # Tiny cross-lane / cross-split merge, fused into the same jit: exact
    # first-occurrence argmax (each lane slot holds the smallest winning column
    # of its lane class, so min over equal-max candidates == argmax).
    row_max = jnp.max(max_out, axis=(0, 2))                          # (Sp,)
    big = jnp.iinfo(jnp.int32).max
    cand = jnp.where(max_out == row_max[None, :, None], idx_out, big)
    tokens = jnp.min(cand, axis=(0, 2)).astype(jnp.int32)            # (Sp,)
    return tokens[:S]


def greedy_sample_pallas(hidden_sel: jax.Array, embedding: jax.Array, *,
                         vocab_size: Optional[int] = None) -> jax.Array:
    """Standalone convenience wrapper (prepares the embedding per call; prefer
    GreedySampler / prepare_embedding for repeated sampling)."""
    e, plan = prepare_embedding(embedding, vocab_size)
    return _greedy_sample_core(hidden_sel, None, e, vocab_size=plan.V,
                               tv=plan.tv, n_splits=plan.n_splits,
                               tiles_per_split=plan.tiles_per_split,
                               vmem_cap=plan.vmem_cap)


class GreedySampler:
    def __init__(self, vocab_size: int) -> None:
        self.vocab_size = vocab_size
        self._emb_src = None
        self._emb_prepared = None
        self._plan = None

    def _get_prepared(self, embedding):
        # One-time (cached) weight prep: the per-call path never re-reads /
        # re-writes the full-vocab embedding in HBM.
        if self._emb_prepared is None or embedding is not self._emb_src:
            e, plan = prepare_embedding(embedding, self.vocab_size)
            self._emb_prepared = jax.block_until_ready(e)
            self._plan = plan
            self._emb_src = embedding
        return self._emb_prepared, self._plan

    def forward(self, embedding: jax.Array, hidden_states: jax.Array,
                input_metadata: InputMetadata) -> List[int]:
        emb, plan = self._get_prepared(embedding)

        indices = None
        if input_metadata.num_prompts > 0:
            assert input_metadata.num_generation_tokens == 0
            indices = np.cumsum(input_metadata.prompt_lens) - 1
            indices = jnp.asarray(indices, dtype=jnp.int32)

        next_tokens = _greedy_sample_core(
            hidden_states, indices, emb, vocab_size=plan.V, tv=plan.tv,
            n_splits=plan.n_splits, tiles_per_split=plan.tiles_per_split,
            vmem_cap=plan.vmem_cap)

        num_tokens = int(next_tokens.shape[0])     # API edge case fallback
        if input_metadata.num_prompts > 0:
            num_tokens = input_metadata.num_prompts
        if input_metadata.num_generation_tokens > 0:
            num_tokens = input_metadata.num_generation_tokens

        next_tokens = jax.block_until_ready(next_tokens)
        return np.asarray(next_tokens).tolist()[:num_tokens]


if __name__ == "__main__":
    key = jax.random.PRNGKey(0)
    k1, k2 = jax.random.split(key)

    vocab_size = 256
    hidden = 32
    prompt_lens = [3, 5]
    num_prompts = len(prompt_lens)
    num_tokens_total = sum(prompt_lens)  # 8

    embedding = jax.random.normal(k1, (vocab_size, hidden), dtype=jnp.float32)
    hidden_states = jax.random.normal(
        k2, (num_tokens_total, hidden), dtype=jnp.float32)

    sampler = GreedySampler(vocab_size)

    # Prompt path (row gather of last token per prompt).
    meta = InputMetadata(num_prompts=num_prompts, prompt_lens=prompt_lens,
                         num_generation_tokens=0)
    next_tokens = sampler.forward(embedding, hidden_states, meta)

    # pure-JAX reference with the same bf16-stream / f32-accumulate numerics
    idx = jnp.asarray(np.cumsum(prompt_lens) - 1, dtype=jnp.int32)
    e_bf = embedding.astype(jnp.bfloat16)
    ref_logits = lax.dot_general(hidden_states[idx].astype(jnp.bfloat16), e_bf,
                                 dimension_numbers=(((1,), (1,)), ((), ())),
                                 preferred_element_type=jnp.float32)
    ref = np.asarray(jax.block_until_ready(
        jnp.argmax(ref_logits, axis=-1))).tolist()[:num_prompts]
    assert next_tokens == ref, (next_tokens, ref)

    # Decode path (num_generation_tokens > 0); the prepared embedding is reused
    # from the cache, so no re-cast / re-pad HBM traffic on this call.
    meta_dec = InputMetadata(num_prompts=0, prompt_lens=[],
                             num_generation_tokens=num_tokens_total)
    dec_tokens = sampler.forward(embedding, hidden_states, meta_dec)
    ref_logits2 = lax.dot_general(hidden_states.astype(jnp.bfloat16), e_bf,
                                  dimension_numbers=(((1,), (1,)), ((), ())),
                                  preferred_element_type=jnp.float32)
    ref2 = np.asarray(jax.block_until_ready(
        jnp.argmax(ref_logits2, axis=-1))).tolist()[:num_tokens_total]
    assert dec_tokens == ref2, (dec_tokens, ref2)

    print("KERNEL_OK")
</pallas_src>

<mosaic_0001>
module attributes {stable_mosaic.version = 11 : i64} {
  func.func @kernel(%arg0: i32, %arg1: i32, %arg2: memref<8x32xbf16, #tpu.memory_space<vmem>>, %arg3: memref<256x32xbf16, #tpu.memory_space<vmem>>, %arg4: memref<1x8x128xf32, #tpu.memory_space<vmem>>, %arg5: memref<1x8x128xi32, #tpu.memory_space<vmem>>) attributes {dimension_semantics = [#tpu.dimension_semantics<parallel>, #tpu.dimension_semantics<arbitrary>], iteration_bounds = array<i64: 1, 1>, scalar_prefetch = 0 : i64, scratch_operands = 0 : i64, tpu.core_type = #tpu.core_type<tc>, window_params = [{pipeline_mode = #tpu.pipeline_mode<synchronous>, transform_indices = @transform_0, window_bounds = array<i64: 8, 32>}, {transform_indices = @transform_1, window_bounds = array<i64: 256, 32>}, {transform_indices = @transform_2, window_bounds = array<i64: 1, 8, 128>}, {transform_indices = @transform_3, window_bounds = array<i64: 1, 8, 128>}]} {
    %c0_i32 = arith.constant 0 : i32
    %0 = arith.cmpi eq, %arg1, %c0_i32 : i32
    %1 = arith.extui %0 : i1 to i32
    %c0_i32_0 = arith.constant 0 : i32
    %2 = arith.cmpi ne, %1, %c0_i32_0 : i32
    scf.if %2 {
      %cst_17 = arith.constant 0xFF800000 : f32
      %34 = vector.broadcast %cst_17 : f32 to vector<1x8x128xf32>
      %c0_18 = arith.constant 0 : index
      %c0_19 = arith.constant 0 : index
      %c0_20 = arith.constant 0 : index
      %35 = vector.load %arg4[%c0_18, %c0_19, %c0_20] : memref<1x8x128xf32, #tpu.memory_space<vmem>>, vector<1x8x128xf32>
      tpu.vector_store %arg4[%c0_18, %c0_19, %c0_20], %34 {strides = array<i32>} : memref<1x8x128xf32, #tpu.memory_space<vmem>>, vector<1x8x128xf32>,
      %c0_i32_21 = arith.constant 0 : i32
      %36 = vector.broadcast %c0_i32_21 : i32 to vector<1x8x128xi32>
      %c0_22 = arith.constant 0 : index
      %c0_23 = arith.constant 0 : index
      %c0_24 = arith.constant 0 : index
      %37 = vector.load %arg5[%c0_22, %c0_23, %c0_24] : memref<1x8x128xi32, #tpu.memory_space<vmem>>, vector<1x8x128xi32>
      tpu.vector_store %arg5[%c0_22, %c0_23, %c0_24], %36 {strides = array<i32>} : memref<1x8x128xi32, #tpu.memory_space<vmem>>, vector<1x8x128xi32>,
    } else {
    }
    %c0 = arith.constant 0 : index
    %c0_1 = arith.constant 0 : index
    %3 = vector.load %arg2[%c0, %c0_1] : memref<8x32xbf16, #tpu.memory_space<vmem>>, vector<8x32xbf16>
    %c0_2 = arith.constant 0 : index
    %c0_3 = arith.constant 0 : index
    %4 = vector.load %arg3[%c0_2, %c0_3] : memref<256x32xbf16, #tpu.memory_space<vmem>>, vector<256x32xbf16>
    %cst = arith.constant dense<0.000000e+00> : vector<8x256xf32>
    %5 = tpu.matmul %3, %4, %cst {dimension_numbers = #tpu.dot_dimension_numbers<[1], [1], [0], [0], [0, 0, 1, 0], [], []>} : vector<8x32xbf16>, vector<256x32xbf16>, vector<8x256xf32> -> vector<8x256xf32>
    %c1_i32 = arith.constant 1 : i32
    %6 = arith.muli %arg0, %c1_i32 : i32
    %7 = arith.addi %6, %arg1 : i32
    %c256_i32 = arith.constant 256 : i32
    %8 = arith.muli %7, %c256_i32 : i32
    %9 = tpu.iota {dimensions = array<i32: 1>} : vector<8x128xi32>
    %c0_4 = arith.constant 0 : index
    %c0_5 = arith.constant 0 : index
    %c0_6 = arith.constant 0 : index
    %10 = vector.load %arg4[%c0_4, %c0_5, %c0_6] : memref<1x8x128xf32, #tpu.memory_space<vmem>>, vector<1x8x128xf32>
    %11 = vector.shape_cast %10 : vector<1x8x128xf32> to vector<8x128xf32>
    %c0_7 = arith.constant 0 : index
    %c0_8 = arith.constant 0 : index
    %c0_9 = arith.constant 0 : index
    %12 = vector.load %arg5[%c0_7, %c0_8, %c0_9] : memref<1x8x128xi32, #tpu.memory_space<vmem>>, vector<1x8x128xi32>
    %13 = vector.shape_cast %12 : vector<1x8x128xi32> to vector<8x128xi32>
    %c0_i32_10 = arith.constant 0 : i32
    %14 = arith.addi %8, %c0_i32_10 : i32
    %15 = vector.broadcast %14 : i32 to vector<8x128xi32>
    %16 = arith.addi %15, %9 : vector<8x128xi32>
    %17 = vector.extract_strided_slice %5 {offsets = [0, 0], sizes = [8, 128], strides = [1, 1]} : vector<8x256xf32> to vector<8x128xf32>
    %18 = arith.cmpf ogt, %17, %11 : vector<8x128xf32>
    %19 = arith.select %18, %16, %13 : vector<8x128xi1>, vector<8x128xi32>
    %20 = arith.select %18, %17, %11 : vector<8x128xi1>, vector<8x128xf32>
    %c128_i32 = arith.constant 128 : i32
    %21 = arith.addi %8, %c128_i32 : i32
    %22 = vector.broadcast %21 : i32 to vector<8x128xi32>
    %23 = arith.addi %22, %9 : vector<8x128xi32>
    %24 = vector.extract_strided_slice %5 {offsets = [0, 128], sizes = [8, 128], strides = [1, 1]} : vector<8x256xf32> to vector<8x128xf32>
    %25 = arith.cmpf ogt, %24, %20 : vector<8x128xf32>
    %26 = arith.select %25, %23, %19 : vector<8x128xi1>, vector<8x128xi32>
    %27 = arith.select %25, %24, %20 : vector<8x128xi1>, vector<8x128xf32>
    %c0_11 = arith.constant 0 : index
    %c0_12 = arith.constant 0 : index
    %c0_13 = arith.constant 0 : index
    %28 = vector.load %arg4[%c0_11, %c0_12, %c0_13] : memref<1x8x128xf32, #tpu.memory_space<vmem>>, vector<1x8x128xf32>
    %29 = vector.shape_cast %28 : vector<1x8x128xf32> to vector<8x128xf32>
    %30 = vector.shape_cast %27 : vector<8x128xf32> to vector<1x8x128xf32>
    tpu.vector_store %arg4[%c0_11, %c0_12, %c0_13], %30 {strides = array<i32>} : memref<1x8x128xf32, #tpu.memory_space<vmem>>, vector<1x8x128xf32>,
    %c0_14 = arith.constant 0 : index
    %c0_15 = arith.constant 0 : index
    %c0_16 = arith.constant 0 : index
    %31 = vector.load %arg5[%c0_14, %c0_15, %c0_16] : memref<1x8x128xi32, #tpu.memory_space<vmem>>, vector<1x8x128xi32>
    %32 = vector.shape_cast %31 : vector<1x8x128xi32> to vector<8x128xi32>
    %33 = vector.shape_cast %26 : vector<8x128xi32> to vector<1x8x128xi32>
    tpu.vector_store %arg5[%c0_14, %c0_15, %c0_16], %33 {strides = array<i32>} : memref<1x8x128xi32, #tpu.memory_space<vmem>>, vector<1x8x128xi32>,
    return
  }
  func.func @transform_0(%arg0: i32, %arg1: i32) -> (i32, i32) {
    %c0_i32 = arith.constant 0 : i32
    %c0_i32_0 = arith.constant 0 : i32
    %c0_i32_1 = arith.constant 0 : i32
    return %c0_i32, %c0_i32_0 : i32, i32
  }
  func.func @transform_1(%arg0: i32, %arg1: i32) -> (i32, i32) {
    %c1_i32 = arith.constant 1 : i32
    %0 = arith.muli %arg0, %c1_i32 : i32
    %1 = arith.addi %0, %arg1 : i32
    %c0_i32 = arith.constant 0 : i32
    %c0_i32_0 = arith.constant 0 : i32
    return %1, %c0_i32 : i32, i32
  }
  func.func @transform_2(%arg0: i32, %arg1: i32) -> (i32, i32, i32) {
    %c0_i32 = arith.constant 0 : i32
    %c0_i32_0 = arith.constant 0 : i32
    %c0_i32_1 = arith.constant 0 : i32
    return %arg0, %c0_i32, %c0_i32_0 : i32, i32, i32
  }
  func.func @transform_3(%arg0: i32, %arg1: i32) -> (i32, i32, i32) {
    %c0_i32 = arith.constant 0 : i32
    %c0_i32_0 = arith.constant 0 : i32
    %c0_i32_1 = arith.constant 0 : i32
    return %arg0, %c0_i32, %c0_i32_0 : i32, i32, i32
  }
}

</mosaic_0001>

<bundles_post_ra>
// kernel: _greedy_sample_core.1
= control target key start
LH: loop header
LB: loop body
LE: loop exit
PB: predicated region body
PF: predicated region fallthrough
CT: control target
= control target key end

     0   :  { %vm155_vm0 = vcmask 261120   ;;  %v250_v25 = vlaneseq  ;;  %s437_s1 = inlined_call_operand.vmem [shape: bf16[256,32], index: 1, kind: input, shape index: {}]   ;;  %s438_s0 = inlined_call_operand.vmem [shape: bf16[8,32], index: 0, kind: input, shape index: {}]   ;;  %s439_s2 = inlined_call_operand.vmem [shape: f32[1,8,128], index: 2, kind: output, shape index: {0}]   ;;  %s440_s3 = inlined_call_operand.vmem [shape: s32[1,8,128], index: 3, kind: output, shape index: {1}]  }
   0x1   :  { %v326_v0 = vld [vmem:[%s437_s1 + $0x40] sm:$0xff]   ;;  %v328_v2 = vld [vmem:[%s437_s1 + $0x48] sm:$0xff]   ;;  %v330_v6 = vld [vmem:[%s437_s1 + $0x50] sm:$0xff]  }
   0x2   :  { %v327_v1 = vld [vmem:[%s437_s1] sm:$0xff]   ;;  %316 = vmatprep.subr.msk.bf16.mxu0 %vm155_vm0, %v326_v0  ;;  %v329_v4 = vld [vmem:[%s437_s1 + $0x8] sm:$0xff]   ;;  %v331_v7 = vld [vmem:[%s437_s1 + $0x10] sm:$0xff]   ;;  %v251_v26 = vand.u32 127, %v250_v25 }
   0x3   :  { %v160_v3 = vsel %vm155_vm0, %v327_v1, 0  ;;  %v163_v5 = vsel %vm155_vm0, %v329_v4, 0  ;;  %v42_v8 = vld [vmem:[%s438_s0] sm:$0xf]  ;;  %v166_v9 = vsel %vm155_vm0, %v331_v7, 0  ;;  %v332_v10 = vld [vmem:[%s437_s1 + $0x58] sm:$0xff]  }
   0x4   :  { %299 = vmatpush3.bf16.xpose.msra.mxu0 %v160_v3  ;;  %314 = vmatprep.mubr.msk.bf16.mxu0 %vm155_vm0, %v42_v8  ;;  %v333_v11 = vld [vmem:[%s437_s1 + $0x18] sm:$0xff]   ;;  %v334_v13 = vld [vmem:[%s437_s1 + $0x60] sm:$0xff]   ;;  %v336_v16 = vld [vmem:[%s437_s1 + $0x68] sm:$0xff]   ;;  %v261_v28 = vadd.s32 128, %v251_v26 }
   0x5   :  { %317 = vmatprep.subr.msk.bf16.mxu0 %vm155_vm0, %v328_v2  ;;  %v169_v12 = vsel %vm155_vm0, %v333_v11, 0  ;;  %v335_v14 = vld [vmem:[%s437_s1 + $0x20] sm:$0xff]   ;;  %v337_v17 = vld [vmem:[%s437_s1 + $0x28] sm:$0xff]   ;;  %v338_v19 = vld [vmem:[%s437_s1 + $0x70] sm:$0xff]  }
   0x6   :  { %v172_v15 = vsel %vm155_vm0, %v335_v14, 0  ;;  %v175_v18 = vsel %vm155_vm0, %v337_v17, 0  ;;  %v339_v20 = vld [vmem:[%s437_s1 + $0x30] sm:$0xff]   ;;  %v340_v22 = vld [vmem:[%s437_s1 + $0x78] sm:$0xff]  }
   0x7   :  { %v178_v21 = vsel %vm155_vm0, %v339_v20, 0  ;;  %v341_v23 = vld [vmem:[%s437_s1 + $0x38] sm:$0xff]  }
   0x8   :  { %v181_v24 = vsel %vm155_vm0, %v341_v23, 0 }
   0xc   :  { %301 = vmatpush3.bf16.xpose.msra.mxu0 %v163_v5 }
   0xd   :  { %318 = vmatprep.subr.msk.bf16.mxu0 %vm155_vm0, %v330_v6 }
  0x14   :  { %303 = vmatpush3.bf16.xpose.msra.mxu0 %v166_v9 }
  0x15   :  { %319 = vmatprep.subr.msk.bf16.mxu0 %vm155_vm0, %v332_v10 }
  0x1c   :  { %305 = vmatpush3.bf16.xpose.msra.mxu0 %v169_v12 }
  0x1d   :  { %320 = vmatprep.subr.msk.bf16.mxu0 %vm155_vm0, %v334_v13 }
  0x24   :  { %307 = vmatpush3.bf16.xpose.msra.mxu0 %v172_v15 }
  0x25   :  { %321 = vmatprep.subr.msk.bf16.mxu0 %vm155_vm0, %v336_v16 }
  0x2c   :  { %309 = vmatpush3.bf16.xpose.msra.mxu0 %v175_v18 }
  0x2d   :  { %322 = vmatprep.subr.msk.bf16.mxu0 %vm155_vm0, %v338_v19 }
  0x34   :  { %311 = vmatpush3.bf16.xpose.msra.mxu0 %v178_v21 }
  0x35   :  { %323 = vmatprep.subr.msk.bf16.mxu0 %vm155_vm0, %v340_v22 }
  0x3c   :  { %313 = vmatpush3.bf16.xpose.msra.mxu0 %v181_v24 }
  0x43   :  { %315 = vmatmul.mubr.msk.bf16.vlgmr.msra.gmra.mrb[0].mxu0 %vm155_vm0, %v42_v8 }
 0x116   :  { %v241_v27 = vpop.f32.mrb[0].mxu0 }
 0x117   :  { %vm256_vm1 = vcmp.gt.f32.partialorder %v241_v27, -inf  ;;  %v243_v29 = vpop.f32.mrb[1].mxu0 }
 0x118   :  { %v257_v30 = vsel %vm256_vm1, %v251_v26, 0  ;;  %v258_v31 = vsel %vm256_vm1, %v241_v27, -inf  ;;  %v245_v32 = vpop.f32.mrb[2].mxu0 }
 0x119   :  { %vm262_vm2 = vcmp.gt.f32.partialorder %v243_v29, %v258_v31  ;;  %v246_v33 = vpop.f32.mrb[3].mxu0 }
 0x11a   :  { %v263_v34 = vsel %vm262_vm2, %v261_v28, %v257_v30  ;;  %v264_v35 = vsel %vm262_vm2, %v243_v29, %v258_v31 }
 0x11b   :  { %265 = vst [vmem:[%s439_s2] sm:$0xff] %v264_v35  ;;  %266 = vst [vmem:[%s440_s3] sm:$0xff] %v263_v34 }

</bundles_post_ra>
